<compile_context>
chip_gen: v6e
topology: v6e:2x2x1
jax: 0.10.0
libtpu: 0.0.40
codegen_flags: <defaults>
</compile_context>

<pallas_src>
import jax
import jax.numpy as jnp
from jax.experimental import pallas as pl
from jax.experimental.pallas import tpu as pltpu

EPS = 1e-5  # nn.BatchNorm2d default


def _conv_stats_kernel(x_ref, w_ref, psum_ref, psumsq_ref):
    """Pass 1 (stats only): conv tile -> per-tile BN partial sums.

    x_ref     : (TR, Kp)    im2col rows for this tile (bf16)
    w_ref     : (Kp, Cout)  flattened conv weights (bf16, grid-constant/resident)
    psum_ref  : (8, Cout)   per-tile partial channel sums (8 sublane partials)
    psumsq_ref: (8, Cout)   per-tile partial channel sums of squares
    """
    acc = jnp.dot(x_ref[...], w_ref[...], preferred_element_type=jnp.float32)
    r, c = acc.shape
    a3 = acc.reshape(r // 8, 8, c)          # vreg-aligned split: no data movement
    psum_ref[...] = jnp.sum(a3, axis=0)     # VPU adds; final 8-row fold in wrapper
    # TODO(synk): E[x^2]-E[x]^2 can cancel badly if |mean| >> std of the conv
    #             output; a shifted / Welford accumulation would be more robust.
    psumsq_ref[...] = jnp.sum(a3 * a3, axis=0)


def _conv_bn_relu_kernel(x_ref, w_ref, scale_ref, shift_ref, o_ref):
    """Pass 2: recompute the conv tile, apply folded BN scale/shift + ReLU.

    scale_ref/shift_ref: (8, Cout) pre-broadcast blocks (full-sublane).
    """
    acc = jnp.dot(x_ref[...], w_ref[...], preferred_element_type=jnp.float32)
    r, c = acc.shape
    y = acc.reshape(r // 8, 8, c) * scale_ref[...] + shift_ref[...]
    o_ref[...] = jnp.maximum(y, 0.0).reshape(r, c).astype(o_ref.dtype)


def conv_block(x_nchw, w_oihw, bias, gamma, beta, *, max_row_tile=1024):
    """x_nchw: (N, Cin, H, W) float32. Returns (N, Cout, H, W) float32."""
    del bias  # cancelled exactly by training-mode BN mean subtraction
    N, Cin, H, W = x_nchw.shape
    Cout, _, KH, KW = w_oihw.shape
    ph, pw = (KH - 1) // 2, (KW - 1) // 2

    # ---- wrapper-side layout plumbing (plain JAX, Cin is tiny) -------------
    # bf16 activations/weights halve every HBM stream; accumulation stays f32.
    x_nhwc = jnp.transpose(x_nchw, (0, 2, 3, 1)).astype(jnp.bfloat16)
    x_pad = jnp.pad(x_nhwc, ((0, 0), (ph, ph), (pw, pw), (0, 0)))

    K_real = KH * KW * Cin
    Kp = ((K_real + 7) // 8) * 8            # sublane-multiple only, NOT 128
    # im2col: fold the KHxKWxCin patch (+ tiny K pad) into the lane axis,
    # with the pad folded into the concat (single materialization).
    cols = [x_pad[:, kh:kh + H, kw:kw + W, :]
            for kh in range(KH) for kw in range(KW)]
    if Kp > K_real:
        cols.append(jnp.zeros((N, H, W, Kp - K_real), jnp.bfloat16))
    patches = jnp.concatenate(cols, axis=-1).reshape(N * H * W, Kp)

    rows = N * H * W
    # Big tiles amortize the ~0.35us/step overhead, but keep >= 2 tiles so the
    # "parallel" grid can shard across v7x's two TensorCores.
    row_tile = min(max_row_tile, max(8, ((rows + 15) // 16) * 8))
    assert row_tile % 8 == 0
    rows_pad = ((rows + row_tile - 1) // row_tile) * row_tile
    n_tiles = rows_pad // row_tile
    if rows_pad > rows:
        # zero rows give zero conv output -> zero sum / sumsq contribution
        patches = jnp.pad(patches, ((0, rows_pad - rows), (0, 0)))

    # (Cout, Cin, KH, KW) -> (KH, KW, Cin, Cout) -> (K_real, Cout) -> (Kp, Cout)
    w_flat = jnp.transpose(w_oihw, (2, 3, 1, 0)).reshape(K_real, Cout)
    w_flat = jnp.pad(w_flat, ((0, Kp - K_real), (0, 0))).astype(jnp.bfloat16)

    flops_mm = 2 * rows_pad * Kp * Cout

    # ---- pass 1: stats only (conv tile never hits HBM) ----------------------
    psum, psumsq = pl.pallas_call(
        _conv_stats_kernel,
        out_shape=(
            jax.ShapeDtypeStruct((n_tiles * 8, Cout), jnp.float32),
            jax.ShapeDtypeStruct((n_tiles * 8, Cout), jnp.float32),
        ),
        grid=(n_tiles,),
        in_specs=[
            pl.BlockSpec((row_tile, Kp), lambda i: (i, 0)),
            pl.BlockSpec((Kp, Cout), lambda i: (0, 0)),   # weights stay resident
        ],
        out_specs=(
            pl.BlockSpec((8, Cout), lambda i: (i, 0)),
            pl.BlockSpec((8, Cout), lambda i: (i, 0)),
        ),
        compiler_params=pltpu.CompilerParams(
            dimension_semantics=("parallel",)),
        cost_estimate=pl.CostEstimate(
            flops=flops_mm + 3 * rows_pad * Cout,
            transcendentals=0,
            bytes_accessed=(rows_pad * Kp * 2 + Kp * Cout * 2
                            + 2 * n_tiles * 8 * Cout * 4)),
    )(patches, w_flat)

    # ---- tiny O(C) BN finalize in plain JAX ---------------------------------
    cnt = jnp.float32(rows)
    mean = psum.sum(axis=0) / cnt
    var = jnp.maximum(psumsq.sum(axis=0) / cnt - mean * mean, 0.0)  # biased var
    inv_std = jax.lax.rsqrt(var + EPS)
    scale = (gamma * inv_std).astype(jnp.float32)
    shift = (beta - mean * scale).astype(jnp.float32)
    # pre-broadcast to full-sublane (8, Cout) blocks (no 1-row tiles in-kernel)
    scale8 = jnp.broadcast_to(scale[None, :], (8, Cout))
    shift8 = jnp.broadcast_to(shift[None, :], (8, Cout))

    # ---- pass 2: recompute conv + scale/shift + ReLU ------------------------
    y = pl.pallas_call(
        _conv_bn_relu_kernel,
        out_shape=jax.ShapeDtypeStruct((rows_pad, Cout), jnp.float32),
        grid=(n_tiles,),
        in_specs=[
            pl.BlockSpec((row_tile, Kp), lambda i: (i, 0)),
            pl.BlockSpec((Kp, Cout), lambda i: (0, 0)),    # resident
            pl.BlockSpec((8, Cout), lambda i: (0, 0)),     # resident
            pl.BlockSpec((8, Cout), lambda i: (0, 0)),     # resident
        ],
        out_specs=pl.BlockSpec((row_tile, Cout), lambda i: (i, 0)),
        compiler_params=pltpu.CompilerParams(
            dimension_semantics=("parallel",)),
        cost_estimate=pl.CostEstimate(
            flops=flops_mm + 3 * rows_pad * Cout,
            transcendentals=0,
            bytes_accessed=(rows_pad * Kp * 2 + Kp * Cout * 2
                            + 2 * 8 * Cout * 4 + rows_pad * Cout * 4)),
    )(patches, w_flat, scale8, shift8)

    # slice BEFORE the transpose so XLA only moves the real (rows, Cout) data
    out = y[:rows, :].reshape(N, H, W, Cout)
    # TODO(synk): keep NHWC end-to-end in a full model to drop this transpose.
    return jnp.transpose(out, (0, 3, 1, 2))  # back to NCHW


def _reference(x, w, b, g, be):
    """Pure-JAX reference of the PyTorch forward (training-mode BN), f32."""
    y = jax.lax.conv_general_dilated(
        x, w, window_strides=(1, 1), padding=((1, 1), (1, 1)),
        dimension_numbers=("NCHW", "OIHW", "NCHW"),
        precision=jax.lax.Precision.HIGHEST)
    y = y + b[None, :, None, None]
    mean = y.mean(axis=(0, 2, 3), keepdims=True)
    var = y.var(axis=(0, 2, 3), keepdims=True)   # biased, like PyTorch BN fwd
    y = (y - mean) / jnp.sqrt(var + EPS) * g[None, :, None, None] + be[None, :, None, None]
    return jnp.maximum(y, 0.0)


if __name__ == "__main__":
    key = jax.random.PRNGKey(0)
    k_x, k_w, k_b, k_g, k_be = jax.random.split(key, 5)

    N, Cin, Cout, H, W = 2, 4, 8, 16, 16
    x = jax.random.normal(k_x, (N, Cin, H, W), dtype=jnp.float32)
    fan_in = Cin * 3 * 3
    bound = 1.0 / (fan_in ** 0.5)
    w = jax.random.uniform(k_w, (Cout, Cin, 3, 3), jnp.float32, -bound, bound)
    b = jax.random.uniform(k_b, (Cout,), jnp.float32, -bound, bound)
    gamma = 1.0 + 0.1 * jax.random.normal(k_g, (Cout,), jnp.float32)
    beta = 0.1 * jax.random.normal(k_be, (Cout,), jnp.float32)

    fwd = jax.jit(conv_block, static_argnames=("max_row_tile",))
    out = fwd(x, w, b, gamma, beta)
    jax.block_until_ready(out)

    ref = _reference(x, w, b, gamma, beta)
    assert out.shape == (N, Cout, H, W), out.shape
    # Tolerance accounts for the deliberate bf16 MXU inputs (f32 accumulation).
    assert jnp.allclose(out, ref, atol=2.5e-2, rtol=2.5e-2), float(
        jnp.max(jnp.abs(out - ref)))

    print("KERNEL_OK")
</pallas_src>

<mosaic_0001>
module attributes {stable_mosaic.version = 11 : i64} {
  func.func @_conv_stats_kernel(%arg0: i32, %arg1: memref<256x40xbf16, #tpu.memory_space<vmem>>, %arg2: memref<40x8xbf16, #tpu.memory_space<vmem>>, %arg3: memref<8x8xf32, #tpu.memory_space<vmem>>, %arg4: memref<8x8xf32, #tpu.memory_space<vmem>>) attributes {dimension_semantics = [#tpu.dimension_semantics<parallel>], iteration_bounds = array<i64: 2>, scalar_prefetch = 0 : i64, scratch_operands = 0 : i64, tpu.core_type = #tpu.core_type<tc>, window_params = [{transform_indices = @transform_0, window_bounds = array<i64: 256, 40>}, {pipeline_mode = #tpu.pipeline_mode<synchronous>, transform_indices = @transform_1, window_bounds = array<i64: 40, 8>}, {transform_indices = @transform_2, window_bounds = array<i64: 8, 8>}, {transform_indices = @transform_3, window_bounds = array<i64: 8, 8>}]} {
    %c0 = arith.constant 0 : index
    %c0_0 = arith.constant 0 : index
    %0 = vector.load %arg1[%c0, %c0_0] : memref<256x40xbf16, #tpu.memory_space<vmem>>, vector<256x40xbf16>
    %c0_1 = arith.constant 0 : index
    %c0_2 = arith.constant 0 : index
    %1 = vector.load %arg2[%c0_1, %c0_2] : memref<40x8xbf16, #tpu.memory_space<vmem>>, vector<40x8xbf16>
    %cst = arith.constant dense<0.000000e+00> : vector<256x8xf32>
    %2 = tpu.matmul %0, %1, %cst {dimension_numbers = #tpu.dot_dimension_numbers<[1], [0], [0], [1], [0, 0, 1, 1], [], []>} : vector<256x40xbf16>, vector<40x8xbf16>, vector<256x8xf32> -> vector<256x8xf32>
    %3 = vector.shape_cast %2 : vector<256x8xf32> to vector<32x8x8xf32>
    %cst_3 = arith.constant dense<0.000000e+00> : vector<8x8xf32>
    %4 = vector.multi_reduction <add>, %3, %cst_3 [0] : vector<32x8x8xf32> to vector<8x8xf32>
    %c0_4 = arith.constant 0 : index
    %c0_5 = arith.constant 0 : index
    %5 = vector.load %arg3[%c0_4, %c0_5] : memref<8x8xf32, #tpu.memory_space<vmem>>, vector<8x8xf32>
    tpu.vector_store %arg3[%c0_4, %c0_5], %4 {strides = array<i32>} : memref<8x8xf32, #tpu.memory_space<vmem>>, vector<8x8xf32>,
    %6 = arith.mulf %3, %3 : vector<32x8x8xf32>
    %cst_6 = arith.constant dense<0.000000e+00> : vector<8x8xf32>
    %7 = vector.multi_reduction <add>, %6, %cst_6 [0] : vector<32x8x8xf32> to vector<8x8xf32>
    %c0_7 = arith.constant 0 : index
    %c0_8 = arith.constant 0 : index
    %8 = vector.load %arg4[%c0_7, %c0_8] : memref<8x8xf32, #tpu.memory_space<vmem>>, vector<8x8xf32>
    tpu.vector_store %arg4[%c0_7, %c0_8], %7 {strides = array<i32>} : memref<8x8xf32, #tpu.memory_space<vmem>>, vector<8x8xf32>,
    return
  }
  func.func @transform_0(%arg0: i32) -> (i32, i32) {
    %c0_i32 = arith.constant 0 : i32
    %c0_i32_0 = arith.constant 0 : i32
    return %arg0, %c0_i32 : i32, i32
  }
  func.func @transform_1(%arg0: i32) -> (i32, i32) {
    %c0_i32 = arith.constant 0 : i32
    %c0_i32_0 = arith.constant 0 : i32
    %c0_i32_1 = arith.constant 0 : i32
    return %c0_i32, %c0_i32_0 : i32, i32
  }
  func.func @transform_2(%arg0: i32) -> (i32, i32) {
    %c0_i32 = arith.constant 0 : i32
    %c0_i32_0 = arith.constant 0 : i32
    return %arg0, %c0_i32 : i32, i32
  }
  func.func @transform_3(%arg0: i32) -> (i32, i32) {
    %c0_i32 = arith.constant 0 : i32
    %c0_i32_0 = arith.constant 0 : i32
    return %arg0, %c0_i32 : i32, i32
  }
}

module attributes {stable_mosaic.version = 11 : i64} {
  func.func @_conv_bn_relu_kernel(%arg0: i32, %arg1: memref<256x40xbf16, #tpu.memory_space<vmem>>, %arg2: memref<40x8xbf16, #tpu.memory_space<vmem>>, %arg3: memref<8x8xf32, #tpu.memory_space<vmem>>, %arg4: memref<8x8xf32, #tpu.memory_space<vmem>>, %arg5: memref<256x8xf32, #tpu.memory_space<vmem>>) attributes {dimension_semantics = [#tpu.dimension_semantics<parallel>], iteration_bounds = array<i64: 2>, scalar_prefetch = 0 : i64, scratch_operands = 0 : i64, tpu.core_type = #tpu.core_type<tc>, window_params = [{transform_indices = @transform_0, window_bounds = array<i64: 256, 40>}, {pipeline_mode = #tpu.pipeline_mode<synchronous>, transform_indices = @transform_1, window_bounds = array<i64: 40, 8>}, {pipeline_mode = #tpu.pipeline_mode<synchronous>, transform_indices = @transform_2, window_bounds = array<i64: 8, 8>}, {pipeline_mode = #tpu.pipeline_mode<synchronous>, transform_indices = @transform_3, window_bounds = array<i64: 8, 8>}, {transform_indices = @transform_4, window_bounds = array<i64: 256, 8>}]} {
    %c0 = arith.constant 0 : index
    %c0_0 = arith.constant 0 : index
    %0 = vector.load %arg1[%c0, %c0_0] : memref<256x40xbf16, #tpu.memory_space<vmem>>, vector<256x40xbf16>
    %c0_1 = arith.constant 0 : index
    %c0_2 = arith.constant 0 : index
    %1 = vector.load %arg2[%c0_1, %c0_2] : memref<40x8xbf16, #tpu.memory_space<vmem>>, vector<40x8xbf16>
    %cst = arith.constant dense<0.000000e+00> : vector<256x8xf32>
    %2 = tpu.matmul %0, %1, %cst {dimension_numbers = #tpu.dot_dimension_numbers<[1], [0], [0], [1], [0, 0, 1, 1], [], []>} : vector<256x40xbf16>, vector<40x8xbf16>, vector<256x8xf32> -> vector<256x8xf32>
    %3 = vector.shape_cast %2 : vector<256x8xf32> to vector<32x8x8xf32>
    %c0_3 = arith.constant 0 : index
    %c0_4 = arith.constant 0 : index
    %4 = vector.load %arg3[%c0_3, %c0_4] : memref<8x8xf32, #tpu.memory_space<vmem>>, vector<8x8xf32>
    %5 = vector.shape_cast %4 : vector<8x8xf32> to vector<1x8x8xf32>
    %6 = vector.broadcast %5 : vector<1x8x8xf32> to vector<32x8x8xf32>
    %7 = arith.mulf %3, %6 : vector<32x8x8xf32>
    %c0_5 = arith.constant 0 : index
    %c0_6 = arith.constant 0 : index
    %8 = vector.load %arg4[%c0_5, %c0_6] : memref<8x8xf32, #tpu.memory_space<vmem>>, vector<8x8xf32>
    %9 = vector.shape_cast %8 : vector<8x8xf32> to vector<1x8x8xf32>
    %10 = vector.broadcast %9 : vector<1x8x8xf32> to vector<32x8x8xf32>
    %11 = arith.addf %7, %10 : vector<32x8x8xf32>
    %cst_7 = arith.constant 0.000000e+00 : f32
    %12 = vector.broadcast %cst_7 : f32 to vector<32x8x8xf32>
    %13 = arith.maximumf %11, %12 : vector<32x8x8xf32>
    %14 = vector.shape_cast %13 : vector<32x8x8xf32> to vector<256x8xf32>
    %c0_8 = arith.constant 0 : index
    %c0_9 = arith.constant 0 : index
    %15 = vector.load %arg5[%c0_8, %c0_9] : memref<256x8xf32, #tpu.memory_space<vmem>>, vector<256x8xf32>
    tpu.vector_store %arg5[%c0_8, %c0_9], %14 {strides = array<i32>} : memref<256x8xf32, #tpu.memory_space<vmem>>, vector<256x8xf32>,
    return
  }
  func.func @transform_0(%arg0: i32) -> (i32, i32) {
    %c0_i32 = arith.constant 0 : i32
    %c0_i32_0 = arith.constant 0 : i32
    return %arg0, %c0_i32 : i32, i32
  }
  func.func @transform_1(%arg0: i32) -> (i32, i32) {
    %c0_i32 = arith.constant 0 : i32
    %c0_i32_0 = arith.constant 0 : i32
    %c0_i32_1 = arith.constant 0 : i32
    return %c0_i32, %c0_i32_0 : i32, i32
  }
  func.func @transform_2(%arg0: i32) -> (i32, i32) {
    %c0_i32 = arith.constant 0 : i32
    %c0_i32_0 = arith.constant 0 : i32
    %c0_i32_1 = arith.constant 0 : i32
    return %c0_i32, %c0_i32_0 : i32, i32
  }
  func.func @transform_3(%arg0: i32) -> (i32, i32) {
    %c0_i32 = arith.constant 0 : i32
    %c0_i32_0 = arith.constant 0 : i32
    %c0_i32_1 = arith.constant 0 : i32
    return %c0_i32, %c0_i32_0 : i32, i32
  }
  func.func @transform_4(%arg0: i32) -> (i32, i32) {
    %c0_i32 = arith.constant 0 : i32
    %c0_i32_0 = arith.constant 0 : i32
    return %arg0, %c0_i32 : i32, i32
  }
}

</mosaic_0001>

<bundles_post_ra>
// kernel: conv_block.2
= control target key start
LH: loop header
LB: loop body
LE: loop exit
PB: predicated region body
PF: predicated region fallthrough
CT: control target
= control target key end

     0   :  { %s940_s12 = smov 0   ;;  %s1114_s0 = inlined_call_operand.vmem [shape: bf16[512,40], index: 0, kind: input, shape index: {}]   ;;  %s1115_s1 = inlined_call_operand.vmem [shape: bf16[40,8], index: 1, kind: input, shape index: {}]   ;;  %s1116_s2 = inlined_call_operand.vmem [shape: f32[16,8], index: 2, kind: output, shape index: {0}]   ;;  %s1117_s3 = inlined_call_operand.vmem [shape: f32[16,8], index: 3, kind: output, shape index: {1}]  }
   0x1 LB: > { %s946_s13 = sadd.s32 4294967295, %s918_s12   ;;  %p778_p0 = scmp.ge.s32.totalorder %s918_s12, 1  ;;  %s918_s12 = sphi %s940_s12, %s14_s12  }
   0x2   : > { %p141_p1 = scmp.lt.s32.totalorder %s918_s12, 3 }
   0x4   : > { %p142_p2 = pnand %p778_p0, %p141_p1 }
   0x5   : > { %s779_s18 = sshll.u32 (!%p142_p2), %s946_s13, 5  ;;  %p174_p4 = scmp.lt.s32.totalorder (!%p142_p2), %s946_s13, 1 }
   0x6   : > { %145 = sbr.rel (%p142_p2) target bundleno = 289 (0x121), region = 28  ;;  %p169_p3 = scmp.lt.s32.totalorder (!%p142_p2), %s779_s18, 63 }
   0xb   : > { %v893_v0 = vld [vmem:[%s1115_s1 + $0x10] ss:$0 sps:$4 sm:$0xff]   ;;  %vm364_vm0 = vcmask 1043456   ;;  %v894_v1 = vld [vmem:[%s1115_s1 + $0x8] sm:$0xff]   ;;  %v895_v3 = vld [vmem:[%s1115_s1] sm:$0xff]   ;;  %s1119_s18 = smov (!%p169_p3, %s779_s18), 63 }
   0xc   : > { %883 = vmatprep.subr.msk.bf16.mxu0 %vm364_vm0, %v893_v0  ;;  %v366_v2 = vsel %vm364_vm0, %v893_v0, 0  ;;  %884 = vmatprep.subr.msk.bf16.mxu1 %vm364_vm0, %v893_v0  ;;  %s780_s21 = sshll.u32 %s1119_s18, 2  ;;  %vm315_vm1 = vcmask 326656   ;;  %vm529_vm2 = vcmask 64512   ;;  %s1121_s13 = smov (!%p174_p4, %s946_s13), 1 }
   0xd   : > { %840 = vmatpush3.bf16.msra.mxu0 %v366_v2  ;;  %880 = vmatpush3.bf16.msra.mxu1 %v366_v2  ;;  %s963_s24 = scalar_lea.vmem %s1114_s0, %s780_s21  ;;  %s781_s25 = sshll.u32 %s1121_s13, 3 }
   0xe   : > { %841 = vmatprep.subr.bf16.mxu0 %v894_v1  ;;  %878 = vmatprep.subr.bf16.mxu1 %v894_v1  ;;  %v896_v4 = vld [vmem:[%s963_s24] sm:$0xff]   ;;  %v897_v5 = vld [vmem:[%s963_s24 + $0x8] sm:$0xff]   ;;  %v898_v6 = vld [vmem:[%s963_s24 + $0x10] sm:$0xff]   ;;  %s177_s28 = scalar_lea.vmem %s1116_s2, %s781_s25  ;;  %s181_s4 = scalar_lea.vmem %s1117_s3, %s781_s25 }
   0xf   : > { %845 = vmatprep.mubr.msk.bf16.mxu0 %vm315_vm1, %v896_v4  ;;  %v899_v7 = vld [vmem:[%s963_s24 + $0x18] sm:$0xff]   ;;  %v900_v8 = vld [vmem:[%s963_s24 + $0x20] sm:$0xff]   ;;  %v905_v10 = vld [vmem:[%s963_s24 + $0x48] sm:$0xff]  }
  0x10   : > { %v904_v9 = vld [vmem:[%s963_s24 + $0x40] sm:$0xff]   ;;  %v906_v11 = vld [vmem:[%s963_s24 + $0x50] sm:$0xff]   ;;  %v907_v12 = vld [vmem:[%s963_s24 + $0x58] sm:$0xff]  }
  0x11   : > { %842 = vmatpush3.bf16.msra.mxu0 %v894_v1  ;;  %881 = vmatpush3.bf16.msra.mxu1 %v894_v1  ;;  %v908_v13 = vld [vmem:[%s963_s24 + $0x60] sm:$0xff]   ;;  %v901_v14 = vld [vmem:[%s963_s24 + $0x28] sm:$0xff]   ;;  %v902_v15 = vld [vmem:[%s963_s24 + $0x30] sm:$0xff]  }
  0x12   : > { %843 = vmatprep.subr.bf16.mxu0 %v895_v3  ;;  %879 = vmatprep.subr.bf16.mxu1 %v895_v3  ;;  %v909_v16 = vld [vmem:[%s963_s24 + $0x68] sm:$0xff]   ;;  %v910_v17 = vld [vmem:[%s963_s24 + $0x70] sm:$0xff]   ;;  %v903_v18 = vld [vmem:[%s963_s24 + $0x38] sm:$0xff]  }
  0x13   : > { %861 = vmatprep.mubr.msk.bf16.mxu1 %vm315_vm1, %v904_v9  ;;  %v911_v19 = vld [vmem:[%s963_s24 + $0x78] sm:$0xff]  }
  0x15   : > { %844 = vmatpush3.bf16.msra.mxu0 %v895_v3  ;;  %882 = vmatpush3.bf16.msra.mxu1 %v895_v3 }
  0x18   : > { %846 = vmatmul.mubr.msk.bf16.vlgmr.msra.gmra.mxu0 %vm315_vm1, %v897_v5  ;;  %862 = vmatmul.mubr.msk.bf16.vlgmr.msra.gmra.mxu1 %vm315_vm1, %v905_v10 }
  0x19   : > { %849 = vmatprep.mubr.msk.bf16.mxu0 %vm315_vm1, %v898_v6  ;;  %865 = vmatprep.mubr.msk.bf16.mxu1 %vm315_vm1, %v906_v11 }
  0x20   : > { %850 = vmatmul.mubr.msk.bf16.gmra.mxu0 %vm315_vm1, %v899_v7  ;;  %866 = vmatmul.mubr.msk.bf16.gmra.mxu1 %vm315_vm1, %v907_v12 }
  0x21   : > { %853 = vmatprep.mubr.msk.bf16.mxu0 %vm315_vm1, %v900_v8  ;;  %869 = vmatprep.mubr.msk.bf16.mxu1 %vm315_vm1, %v908_v13 }
  0x28   : > { %854 = vmatmul.mubr.msk.bf16.gmra.mxu0 %vm315_vm1, %v901_v14  ;;  %870 = vmatmul.mubr.msk.bf16.gmra.mxu1 %vm315_vm1, %v909_v16 }
  0x29   : > { %857 = vmatprep.mubr.msk.bf16.mxu0 %vm315_vm1, %v902_v15  ;;  %873 = vmatprep.mubr.msk.bf16.mxu1 %vm315_vm1, %v910_v17 }
  0x30   : > { %858 = vmatmul.mubr.msk.bf16.gmra.mxu0 %vm315_vm1, %v903_v18  ;;  %874 = vmatmul.mubr.msk.bf16.gmra.mxu1 %vm315_vm1, %v911_v19 }
  0xd8   : > { %v847_v20 = vpop.f32.mrf.mxu0  ;;  %v997_v25 = vpop.f32.mrf.mxu1 }
  0xd9   : > { %v596_v26 = vmul.f32 %v847_v20, %v847_v20  ;;  %v533_v33 = vsel %vm529_vm2, %v847_v20, 0.0 }
  0xda   : > { %v402_v21 = vpop.f32.mrf.mxu0  ;;  %v1001_v32 = vpop.f32.mrf.mxu1 }
  0xdb   : > { %v594_v23 = vmul.f32 %v402_v21, %v402_v21  ;;  %v530_v27 = vsel %vm529_vm2, %v402_v21, 0.0  ;;  %v629_v41 = vsel %vm529_vm2, %v596_v26, 0.0 }
  0xdc   : > { %v848_v22 = vpop.f32.mrf.mxu0  ;;  %v1006_v40 = vpop.f32.mrf.mxu1 }
  0xdd   : > { %v626_v34 = vsel %vm529_vm2, %v594_v23, 0.0  ;;  %v597_v35 = vmul.f32 %v848_v22, %v848_v22  ;;  %v535_v42 = vsel %vm529_vm2, %v848_v22, 0.0 }
  0xde   : > { %v405_v24 = vpop.f32.mrf.mxu0  ;;  %v1010_v47 = vpop.f32.mrf.mxu1 }
  0xdf   : > { %v531_v28 = vsel %vm529_vm2, %v405_v24, 0.0  ;;  %v595_v29 = vmul.f32 %v405_v24, %v405_v24  ;;  %v631_v48 = vsel %vm529_vm2, %v597_v35, 0.0 }
  0xe0   : > { %v532_v30 = vadd.f32 %v531_v28, %v530_v27  ;;  %v851_v31 = vpop.f32.mrf.mxu0  ;;  %v1014_v53 = vpop.f32.mrf.mxu1 }
  0xe1   : > { %v627_v36 = vsel %vm529_vm2, %v595_v29, 0.0  ;;  %v600_v54 = vmul.f32 %v851_v31, %v851_v31  ;;  %v541_v61 = vsel %vm529_vm2, %v851_v31, 0.0 }
  0xe2   : > { %v534_v37 = vadd.f32 %v533_v33, %v532_v30  ;;  %v628_v38 = vadd.f32 %v627_v36, %v626_v34  ;;  %v418_v39 = vpop.f32.mrf.mxu0  ;;  %v1020_v3 = vpop.f32.mrf.mxu1 }
  0xe3   : > { %v598_v43 = vmul.f32 %v418_v39, %v418_v39  ;;  %v537_v49 = vsel %vm529_vm2, %v418_v39, 0.0  ;;  %v637_v4 = vsel %vm529_vm2, %v600_v54, 0.0 }
  0xe4   : > { %v630_v44 = vadd.f32 %v629_v41, %v628_v38  ;;  %v536_v45 = vadd.f32 %v535_v42, %v534_v37  ;;  %v852_v46 = vpop.f32.mrf.mxu0  ;;  %v1026_v15 = vpop.f32.mrf.mxu1 }
  0xe5   : > { %v633_v55 = vsel %vm529_vm2, %v598_v43, 0.0  ;;  %v601_v62 = vmul.f32 %v852_v46, %v852_v46  ;;  %v543_v5 = vsel %vm529_vm2, %v852_v46, 0.0 }
  0xe6   : > { %v538_v50 = vadd.f32 %v537_v49, %v536_v45  ;;  %v632_v51 = vadd.f32 %v631_v48, %v630_v44  ;;  %v421_v52 = vpop.f32.mrf.mxu0  ;;  %v485_v30 = vpop.f32.mrf.mxu1 }
  0xe7   : > { %v539_v56 = vsel %vm529_vm2, %v421_v52, 0.0  ;;  %v599_v57 = vmul.f32 %v421_v52, %v421_v52  ;;  %v639_v10 = vsel %vm529_vm2, %v601_v62, 0.0 }
  0xe8   : > { %v634_v58 = vadd.f32 %v633_v55, %v632_v51  ;;  %v540_v59 = vadd.f32 %v539_v56, %v538_v50  ;;  %v855_v60 = vpop.f32.mrf.mxu0  ;;  %v1036_v44 = vpop.f32.mrf.mxu1 }
  0xe9   : > { %v635_v63 = vsel %vm529_vm2, %v599_v57, 0.0  ;;  %v604_v16 = vmul.f32 %v855_v60, %v855_v60  ;;  %v549_v23 = vsel %vm529_vm2, %v855_v60, 0.0 }
  0xea   : > { %v542_v0 = vadd.f32 %v541_v61, %v540_v59  ;;  %v636_v1 = vadd.f32 %v635_v63, %v634_v58  ;;  %v434_v2 = vpop.f32.mrf.mxu0  ;;  %v498_v58 = vpop.f32.mrf.mxu1  ;;  %v610_v61 = vmul.f32 %v1001_v32, %v1001_v32 }
  0xeb   : > { %v602_v6 = vmul.f32 %v434_v2, %v434_v2  ;;  %v545_v11 = vsel %vm529_vm2, %v434_v2, 0.0  ;;  %v645_v31 = vsel %vm529_vm2, %v604_v16, 0.0  ;;  %v611_v2 = vmul.f32 %v1010_v47, %v1010_v47 }
  0xec   : > { %v638_v7 = vadd.f32 %v637_v4, %v636_v1  ;;  %v544_v8 = vadd.f32 %v543_v5, %v542_v0  ;;  %v856_v9 = vpop.f32.mrf.mxu0  ;;  %v561_v1 = vsel %vm529_vm2, %v1001_v32, 0.0  ;;  %v613_v32 = vmul.f32 %v1006_v40, %v1006_v40 }
  0xed   : > { %v641_v17 = vsel %vm529_vm2, %v602_v6, 0.0  ;;  %v605_v24 = vmul.f32 %v856_v9, %v856_v9  ;;  %v551_v33 = vsel %vm529_vm2, %v856_v9, 0.0  ;;  %v872_v6 = vpop.f32.mrf.mxu1  ;;  %v563_v9 = vsel %vm529_vm2, %v1010_v47, 0.0 }
  0xee   : > { %v546_v12 = vadd.f32 %v545_v11, %v544_v8  ;;  %v640_v13 = vadd.f32 %v639_v10, %v638_v7  ;;  %v437_v14 = vpop.f32.mrf.mxu0  ;;  %v612_v7 = vmul.f32 %v997_v25, %v997_v25  ;;  %v657_v8 = vsel %vm529_vm2, %v610_v61, 0.0 }
  0xef   : > { %v547_v18 = vsel %vm529_vm2, %v437_v14, 0.0  ;;  %v603_v19 = vmul.f32 %v437_v14, %v437_v14  ;;  %v647_v38 = vsel %vm529_vm2, %v605_v24, 0.0  ;;  %v614_v47 = vmul.f32 %v1020_v3, %v1020_v3 }
  0xf0   : > { %v642_v20 = vadd.f32 %v641_v17, %v640_v13  ;;  %v548_v21 = vadd.f32 %v547_v18, %v546_v12  ;;  %v859_v22 = vpop.f32.mrf.mxu0  ;;  %v565_v12 = vsel %vm529_vm2, %v997_v25, 0.0  ;;  %v659_v13 = vsel %vm529_vm2, %v611_v2, 0.0  ;;  %v501_v17 = vpop.f32.mrf.mxu1 }
  0xf1   : > { %v643_v26 = vsel %vm529_vm2, %v603_v19, 0.0  ;;  %v608_v45 = vmul.f32 %v859_v22, %v859_v22  ;;  %v557_v52 = vsel %vm529_vm2, %v859_v22, 0.0  ;;  %v661_v18 = vsel %vm529_vm2, %v612_v7, 0.0 }
  0xf2   : > { %v550_v27 = vadd.f32 %v549_v23, %v548_v21  ;;  %v644_v28 = vadd.f32 %v643_v26, %v642_v20  ;;  %v450_v29 = vpop.f32.mrf.mxu0  ;;  %v567_v19 = vsel %vm529_vm2, %v1006_v40, 0.0  ;;  %v663_v25 = vsel %vm529_vm2, %v613_v32, 0.0 }
  0xf3   : > { %v606_v34 = vmul.f32 %v450_v29, %v450_v29  ;;  %v553_v39 = vsel %vm529_vm2, %v450_v29, 0.0  ;;  %v653_v59 = vsel %vm529_vm2, %v608_v45, 0.0  ;;  %v569_v22 = vsel %vm529_vm2, %v1020_v3, 0.0 }
  0xf4   : > { %v646_v35 = vadd.f32 %v645_v31, %v644_v28  ;;  %v552_v36 = vadd.f32 %v551_v33, %v550_v27  ;;  %v860_v37 = vpop.f32.mrf.mxu0  ;;  %v615_v23 = vmul.f32 %v485_v30, %v485_v30  ;;  %v875_v27 = vpop.f32.mrf.mxu1  ;;  %v616_v28 = vmul.f32 %v1014_v53, %v1014_v53 }
  0xf5   : > { %v649_v46 = vsel %vm529_vm2, %v606_v34, 0.0  ;;  %v609_v54 = vmul.f32 %v860_v37, %v860_v37  ;;  %v559_v60 = vsel %vm529_vm2, %v860_v37, 0.0  ;;  %v665_v29 = vsel %vm529_vm2, %v614_v47, 0.0 }
  0xf6   : > { %v554_v41 = vadd.f32 %v553_v39, %v552_v36  ;;  %v648_v42 = vadd.f32 %v647_v38, %v646_v35  ;;  %v453_v43 = vpop.f32.mrf.mxu0  ;;  %v571_v40 = vsel %vm529_vm2, %v485_v30, 0.0  ;;  %v573_v34 = vsel %vm529_vm2, %v1014_v53, 0.0  ;;  %v514_v38 = vpop.f32.mrf.mxu1 }
  0xf7   : > { %v555_v48 = vsel %vm529_vm2, %v453_v43, 0.0  ;;  %v607_v49 = vmul.f32 %v453_v43, %v453_v43  ;;  %v655_v0 = vsel %vm529_vm2, %v609_v54, 0.0  ;;  %v617_v35 = vmul.f32 %v1026_v15, %v1026_v15 }
  0xf8   : > { %v650_v50 = vadd.f32 %v649_v46, %v648_v42  ;;  %v556_v51 = vadd.f32 %v555_v48, %v554_v41  ;;  %v667_v3 = vsel %vm529_vm2, %v615_v23, 0.0  ;;  %v669_v39 = vsel %vm529_vm2, %v616_v28, 0.0 }
  0xf9   : > { %v651_v55 = vsel %vm529_vm2, %v607_v49, 0.0  ;;  %v575_v41 = vsel %vm529_vm2, %v1026_v15, 0.0  ;;  %v618_v30 = vmul.f32 %v498_v58, %v498_v58  ;;  %v671_v45 = vsel %vm529_vm2, %v617_v35, 0.0 }
  0xfa   : > { %v558_v56 = vadd.f32 %v557_v52, %v556_v51  ;;  %v652_v57 = vadd.f32 %v651_v55, %v650_v50  ;;  %v577_v53 = vsel %vm529_vm2, %v498_v58, 0.0  ;;  %v619_v46 = vmul.f32 %v501_v17, %v501_v17  ;;  %v876_v50 = vpop.f32.mrf.mxu1 }
  0xfb   : > { %v620_v51 = vmul.f32 %v1036_v44, %v1036_v44  ;;  %v673_v52 = vsel %vm529_vm2, %v618_v30, 0.0  ;;  %v579_v54 = vsel %vm529_vm2, %v501_v17, 0.0 }
  0xfc   : > { %v560_v62 = vadd.f32 %v559_v60, %v558_v56  ;;  %v654_v63 = vadd.f32 %v653_v59, %v652_v57  ;;  %v581_v56 = vsel %vm529_vm2, %v1036_v44, 0.0  ;;  %v621_v57 = vmul.f32 %v872_v6, %v872_v6  ;;  %v517_v61 = vpop.f32.mrf.mxu1 }
  0xfd   : > { %v675_v58 = vsel %vm529_vm2, %v619_v46, 0.0  ;;  %v623_v7 = vmul.f32 %v517_v61, %v517_v61 }
  0xfe   : > { %v656_v4 = vadd.f32 %v655_v0, %v654_v63  ;;  %v562_v5 = vadd.f32 %v561_v1, %v560_v62  ;;  %v677_v62 = vsel %vm529_vm2, %v620_v51, 0.0  ;;  %v583_v63 = vsel %vm529_vm2, %v872_v6, 0.0 }
  0xff   : > { %v622_v0 = vmul.f32 %v514_v38, %v514_v38  ;;  %v589_v6 = vsel %vm529_vm2, %v875_v27, 0.0 }
 0x100   : > { %v564_v10 = vadd.f32 %v563_v9, %v562_v5  ;;  %v658_v11 = vadd.f32 %v657_v8, %v656_v4  ;;  %v679_v4 = vsel %vm529_vm2, %v621_v57, 0.0  ;;  %v585_v5 = vsel %vm529_vm2, %v514_v38, 0.0 }
 0x101   : > { %v624_v9 = vmul.f32 %v875_v27, %v875_v27 }
 0x102   : > { %v566_v14 = vadd.f32 %v565_v12, %v564_v10  ;;  %v660_v16 = vadd.f32 %v659_v13, %v658_v11  ;;  %v681_v10 = vsel %vm529_vm2, %v622_v0, 0.0  ;;  %v587_v11 = vsel %vm529_vm2, %v517_v61, 0.0 }
 0x103   : > { %v625_v13 = vmul.f32 %v876_v50, %v876_v50 }
 0x104   : > { %v662_v20 = vadd.f32 %v661_v18, %v660_v16  ;;  %v568_v21 = vadd.f32 %v567_v19, %v566_v14  ;;  %v683_v14 = vsel %vm529_vm2, %v623_v7, 0.0  ;;  %v685_v18 = vsel %vm529_vm2, %v624_v9, 0.0 }
 0x105   : > { %v591_v19 = vsel %vm529_vm2, %v876_v50, 0.0 }
 0x106   : > { %v570_v24 = vadd.f32 %v569_v22, %v568_v21  ;;  %v664_v26 = vadd.f32 %v663_v25, %v662_v20  ;;  %v687_v21 = vsel %vm529_vm2, %v625_v13, 0.0 }
 0x108   : > { %v666_v31 = vadd.f32 %v665_v29, %v664_v26  ;;  %v572_v33 = vadd.f32 %v571_v40, %v570_v24 }
 0x10a   : > { %v574_v36 = vadd.f32 %v573_v34, %v572_v33  ;;  %v668_v37 = vadd.f32 %v667_v3, %v666_v31 }
 0x10c   : > { %v670_v42 = vadd.f32 %v669_v39, %v668_v37  ;;  %v576_v43 = vadd.f32 %v575_v41, %v574_v36 }
 0x10e   : > { %v578_v48 = vadd.f32 %v577_v53, %v576_v43  ;;  %v672_v49 = vadd.f32 %v671_v45, %v670_v42 }
 0x110   : > { %v674_v15 = vadd.f32 %v673_v52, %v672_v49  ;;  %v580_v55 = vadd.f32 %v579_v54, %v578_v48 }
 0x112   : > { %v582_v59 = vadd.f32 %v581_v56, %v580_v55  ;;  %v676_v60 = vadd.f32 %v675_v58, %v674_v15 }
 0x114   : > { %v678_v1 = vadd.f32 %v677_v62, %v676_v60  ;;  %v584_v2 = vadd.f32 %v583_v63, %v582_v59 }
 0x116   : > { %v586_v44 = vadd.f32 %v585_v5, %v584_v2  ;;  %v680_v8 = vadd.f32 %v679_v4, %v678_v1 }
 0x118   : > { %v682_v12 = vadd.f32 %v681_v10, %v680_v8  ;;  %v588_v32 = vadd.f32 %v587_v11, %v586_v44 }
 0x11a   : > { %v590_v16 = vadd.f32 %v589_v6, %v588_v32  ;;  %v684_v17 = vadd.f32 %v683_v14, %v682_v12 }
 0x11c   : > { %v592_v47 = vadd.f32 %v591_v19, %v590_v16  ;;  %v686_v20 = vadd.f32 %v685_v18, %v684_v17 }
 0x11e   : > { %593 = vst.msk [vmem:[%s177_s28] sm:$0xff] %vm529_vm2, %v592_v47  ;;  %v688_v25 = vadd.f32 %v687_v21, %v686_v20 }
 0x120   : > { %689 = vst.msk [vmem:[%s181_s4] sm:$0xff] %vm529_vm2, %v688_v25 }
 0x121 PF: > { %s14_s12 = sadd.s32 1, %s918_s12  }
 0x122   : > { %p11_p5 = scmp.ge.s32.totalorder %s14_s12, 4  }
 0x124   :  { %13 = sbr.rel (!%p11_p5) target bundleno = 1 (0x1), region = 70 }

// kernel: conv_block.3
= control target key start
LH: loop header
LB: loop body
LE: loop exit
PB: predicated region body
PF: predicated region fallthrough
CT: control target
= control target key end

     0   :  { %s906_s15 = smov 0   ;;  %s1110_s0 = inlined_call_operand.vmem [shape: bf16[512,40], index: 0, kind: input, shape index: {}]   ;;  %s1111_s1 = inlined_call_operand.vmem [shape: bf16[40,8], index: 1, kind: input, shape index: {}]   ;;  %s1112_s2 = inlined_call_operand.vmem [shape: f32[8,8], index: 2, kind: input, shape index: {}]   ;;  %s1113_s3 = inlined_call_operand.vmem [shape: f32[8,8], index: 3, kind: input, shape index: {}]   ;;  %s1114_s4 = inlined_call_operand.vmem [shape: f32[512,8], index: 4, kind: output, shape index: {}]  }
   0x1 LB: > { %s735_s16 = sadd.s32 4294967295, %s879_s15   ;;  %p739_p0 = scmp.ge.s32.totalorder %s879_s15, 1  ;;  %s879_s15 = sphi %s906_s15, %s14_s15  }
   0x2   : > { %p163_p1 = scmp.lt.s32.totalorder %s879_s15, 3 }
   0x4   : > { %p164_p2 = pnand %p739_p0, %p163_p1 }
   0x5   : > { %s740_s21 = sshll.u32 (!%p164_p2), %s735_s16, 5 }
   0x6   : > { %167 = sbr.rel (%p164_p2) target bundleno = 254 (0xfe), region = 36  ;;  %p190_p3 = scmp.lt.s32.totalorder (!%p164_p2), %s740_s21, 63 }
   0xb   : > { %v854_v0 = vld [vmem:[%s1111_s1 + $0x10] ss:$0 sps:$4 sm:$0xff]   ;;  %vm383_vm0 = vcmask 1043456   ;;  %v855_v1 = vld [vmem:[%s1111_s1 + $0x8] sm:$0xff]   ;;  %v856_v3 = vld [vmem:[%s1111_s1] sm:$0xff]   ;;  %s1116_s21 = smov (!%p190_p3, %s740_s21), 63 }
   0xc   : > { %844 = vmatprep.subr.msk.bf16.mxu0 %vm383_vm0, %v854_v0  ;;  %845 = vmatprep.subr.msk.bf16.mxu1 %vm383_vm0, %v854_v0  ;;  %v385_v2 = vsel %vm383_vm0, %v854_v0, 0  ;;  %s741_s24 = sshll.u32 %s1116_s21, 2  ;;  %vm334_vm1 = vcmask 326656   ;;  %v966_v20 = vld [vmem:[%s1112_s2] sm:$0xff]  ;;  %s743_s6 = sshll.u32 %s1116_s21, 3  ;;  %vm646_vm2 = vcmask 64512  }
   0xd   : > { %801 = vmatpush3.bf16.msra.mxu0 %v385_v2  ;;  %841 = vmatpush3.bf16.msra.mxu1 %v385_v2  ;;  %s929_s27 = scalar_lea.vmem %s1110_s0, %s741_s24  ;;  %v971_v22 = vld [vmem:[%s1113_s3] sm:$0xff]  ;;  %s983_s9 = scalar_lea.vmem %s1114_s4, %s743_s6 }
   0xe   : > { %802 = vmatprep.subr.bf16.mxu0 %v855_v1  ;;  %839 = vmatprep.subr.bf16.mxu1 %v855_v1  ;;  %v857_v4 = vld [vmem:[%s929_s27] sm:$0xff]   ;;  %v859_v6 = vld [vmem:[%s929_s27 + $0x8] sm:$0xff]   ;;  %v861_v8 = vld [vmem:[%s929_s27 + $0x10] sm:$0xff]  }
   0xf   : > { %v858_v5 = vld [vmem:[%s929_s27 + $0x40] sm:$0xff]   ;;  %806 = vmatprep.mubr.msk.bf16.mxu0 %vm334_vm1, %v857_v4  ;;  %v860_v7 = vld [vmem:[%s929_s27 + $0x48] sm:$0xff]   ;;  %v862_v9 = vld [vmem:[%s929_s27 + $0x50] sm:$0xff]  }
  0x10   : > { %822 = vmatprep.mubr.msk.bf16.mxu1 %vm334_vm1, %v858_v5  ;;  %v863_v10 = vld [vmem:[%s929_s27 + $0x18] sm:$0xff]   ;;  %v865_v12 = vld [vmem:[%s929_s27 + $0x20] sm:$0xff]   ;;  %v867_v14 = vld [vmem:[%s929_s27 + $0x28] sm:$0xff]  }
  0x11   : > { %803 = vmatpush3.bf16.msra.mxu0 %v855_v1  ;;  %842 = vmatpush3.bf16.msra.mxu1 %v855_v1  ;;  %v864_v11 = vld [vmem:[%s929_s27 + $0x58] sm:$0xff]   ;;  %v866_v13 = vld [vmem:[%s929_s27 + $0x60] sm:$0xff]   ;;  %v868_v15 = vld [vmem:[%s929_s27 + $0x68] sm:$0xff]  }
  0x12   : > { %804 = vmatprep.subr.bf16.mxu0 %v856_v3  ;;  %840 = vmatprep.subr.bf16.mxu1 %v856_v3  ;;  %v869_v16 = vld [vmem:[%s929_s27 + $0x30] sm:$0xff]   ;;  %v871_v18 = vld [vmem:[%s929_s27 + $0x38] sm:$0xff]  }
  0x13   : > { %v870_v17 = vld [vmem:[%s929_s27 + $0x70] sm:$0xff]   ;;  %v872_v19 = vld [vmem:[%s929_s27 + $0x78] sm:$0xff]  }
  0x15   : > { %805 = vmatpush3.bf16.msra.mxu0 %v856_v3  ;;  %843 = vmatpush3.bf16.msra.mxu1 %v856_v3 }
  0x18   : > { %807 = vmatmul.mubr.msk.bf16.vlgmr.msra.gmra.mxu0 %vm334_vm1, %v859_v6  ;;  %823 = vmatmul.mubr.msk.bf16.vlgmr.msra.gmra.mxu1 %vm334_vm1, %v860_v7 }
  0x19   : > { %810 = vmatprep.mubr.msk.bf16.mxu0 %vm334_vm1, %v861_v8  ;;  %826 = vmatprep.mubr.msk.bf16.mxu1 %vm334_vm1, %v862_v9 }
  0x20   : > { %811 = vmatmul.mubr.msk.bf16.gmra.mxu0 %vm334_vm1, %v863_v10  ;;  %827 = vmatmul.mubr.msk.bf16.gmra.mxu1 %vm334_vm1, %v864_v11 }
  0x21   : > { %814 = vmatprep.mubr.msk.bf16.mxu0 %vm334_vm1, %v865_v12  ;;  %830 = vmatprep.mubr.msk.bf16.mxu1 %vm334_vm1, %v866_v13 }
  0x28   : > { %815 = vmatmul.mubr.msk.bf16.gmra.mxu0 %vm334_vm1, %v867_v14  ;;  %831 = vmatmul.mubr.msk.bf16.gmra.mxu1 %vm334_vm1, %v868_v15 }
  0x29   : > { %818 = vmatprep.mubr.msk.bf16.mxu0 %vm334_vm1, %v869_v16  ;;  %834 = vmatprep.mubr.msk.bf16.mxu1 %vm334_vm1, %v870_v17 }
  0x30   : > { %819 = vmatmul.mubr.msk.bf16.gmra.mxu0 %vm334_vm1, %v871_v18  ;;  %835 = vmatmul.mubr.msk.bf16.gmra.mxu1 %vm334_vm1, %v872_v19 }
  0xd8   : > { %v808_v21 = vpop.f32.mrf.mxu0  ;;  %v824_v23 = vpop.f32.mrf.mxu1 }
  0xd9   : > { %v551_v24 = vmul.f32 %v808_v21, %v966_v20  ;;  %v567_v25 = vmul.f32 %v824_v23, %v966_v20 }
  0xda   : > { %v421_v26 = vpop.f32.mrf.mxu0  ;;  %v485_v27 = vpop.f32.mrf.mxu1 }
  0xdb   : > { %v584_v28 = vadd.f32 %v971_v22, %v551_v24  ;;  %v600_v29 = vadd.f32 %v971_v22, %v567_v25  ;;  %v549_v30 = vmul.f32 %v966_v20, %v421_v26  ;;  %v565_v31 = vmul.f32 %v966_v20, %v485_v27 }
  0xdc   : > { %v809_v32 = vpop.f32.mrf.mxu0  ;;  %v825_v33 = vpop.f32.mrf.mxu1 }
  0xdd   : > { %v616_v34 = vmax.f32 %v584_v28, 0.0  ;;  %v632_v35 = vmax.f32 %v600_v29, 0.0  ;;  %v582_v36 = vadd.f32 %v971_v22, %v549_v30  ;;  %v598_v37 = vadd.f32 %v971_v22, %v565_v31 }
  0xde   : > { %v552_v38 = vmul.f32 %v809_v32, %v966_v20  ;;  %v568_v39 = vmul.f32 %v825_v33, %v966_v20  ;;  %v424_v40 = vpop.f32.mrf.mxu0  ;;  %v488_v41 = vpop.f32.mrf.mxu1 }
  0xdf   : > { %649 = vst.msk [vmem:[%s983_s9 + $0x10] sm:$0xff] %vm646_vm2, %v616_v34  ;;  %665 = vst.msk [vmem:[%s983_s9 + $0x90] sm:$0xff] %vm646_vm2, %v632_v35  ;;  %v614_v42 = vmax.f32 %v582_v36, 0.0  ;;  %v630_v43 = vmax.f32 %v598_v37, 0.0  ;;  %v550_v44 = vmul.f32 %v966_v20, %v424_v40  ;;  %v566_v45 = vmul.f32 %v966_v20, %v488_v41 }
  0xe0   : > { %v585_v46 = vadd.f32 %v971_v22, %v552_v38  ;;  %v601_v47 = vadd.f32 %v971_v22, %v568_v39  ;;  %v812_v48 = vpop.f32.mrf.mxu0  ;;  %v828_v49 = vpop.f32.mrf.mxu1 }
  0xe1   : > { %647 = vst.msk [vmem:[%s983_s9] sm:$0xff] %vm646_vm2, %v614_v42  ;;  %663 = vst.msk [vmem:[%s983_s9 + $0x80] sm:$0xff] %vm646_vm2, %v630_v43  ;;  %v583_v50 = vadd.f32 %v971_v22, %v550_v44  ;;  %v599_v51 = vadd.f32 %v971_v22, %v566_v45  ;;  %v555_v52 = vmul.f32 %v812_v48, %v966_v20 }
  0xe2   : > { %v571_v53 = vmul.f32 %v828_v49, %v966_v20  ;;  %v617_v54 = vmax.f32 %v585_v46, 0.0  ;;  %v633_v55 = vmax.f32 %v601_v47, 0.0  ;;  %v437_v56 = vpop.f32.mrf.mxu0  ;;  %v501_v57 = vpop.f32.mrf.mxu1 }
  0xe3   : > { %v615_v58 = vmax.f32 %v583_v50, 0.0  ;;  %v631_v59 = vmax.f32 %v599_v51, 0.0  ;;  %v588_v60 = vadd.f32 %v971_v22, %v555_v52  ;;  %v553_v62 = vmul.f32 %v966_v20, %v437_v56 }
  0xe4   : > { %v604_v61 = vadd.f32 %v971_v22, %v571_v53  ;;  %650 = vst.msk [vmem:[%s983_s9 + $0x18] sm:$0xff] %vm646_vm2, %v617_v54  ;;  %666 = vst.msk [vmem:[%s983_s9 + $0x98] sm:$0xff] %vm646_vm2, %v633_v55  ;;  %v569_v63 = vmul.f32 %v966_v20, %v501_v57  ;;  %v813_v0 = vpop.f32.mrf.mxu0  ;;  %v829_v1 = vpop.f32.mrf.mxu1 }
  0xe5   : > { %648 = vst.msk [vmem:[%s983_s9 + $0x8] sm:$0xff] %vm646_vm2, %v615_v58  ;;  %664 = vst.msk [vmem:[%s983_s9 + $0x88] sm:$0xff] %vm646_vm2, %v631_v59  ;;  %v620_v2 = vmax.f32 %v588_v60, 0.0  ;;  %v556_v4 = vmul.f32 %v813_v0, %v966_v20  ;;  %v572_v5 = vmul.f32 %v829_v1, %v966_v20  ;;  %v586_v6 = vadd.f32 %v971_v22, %v553_v62 }
  0xe6   : > { %v636_v3 = vmax.f32 %v604_v61, 0.0  ;;  %v602_v7 = vadd.f32 %v971_v22, %v569_v63  ;;  %v440_v8 = vpop.f32.mrf.mxu0  ;;  %v504_v9 = vpop.f32.mrf.mxu1 }
  0xe7   : > { %653 = vst.msk [vmem:[%s983_s9 + $0x30] sm:$0xff] %vm646_vm2, %v620_v2  ;;  %v589_v10 = vadd.f32 %v971_v22, %v556_v4  ;;  %v605_v11 = vadd.f32 %v971_v22, %v572_v5  ;;  %v554_v12 = vmul.f32 %v966_v20, %v440_v8  ;;  %v570_v13 = vmul.f32 %v966_v20, %v504_v9 }
  0xe8   : > { %669 = vst.msk [vmem:[%s983_s9 + $0xb0] sm:$0xff] %vm646_vm2, %v636_v3  ;;  %v618_v14 = vmax.f32 %v586_v6, 0.0  ;;  %v634_v15 = vmax.f32 %v602_v7, 0.0  ;;  %v816_v16 = vpop.f32.mrf.mxu0  ;;  %v832_v17 = vpop.f32.mrf.mxu1 }
  0xe9   : > { %v621_v18 = vmax.f32 %v589_v10, 0.0  ;;  %v637_v19 = vmax.f32 %v605_v11, 0.0  ;;  %v587_v21 = vadd.f32 %v971_v22, %v554_v12  ;;  %v603_v23 = vadd.f32 %v971_v22, %v570_v13 }
  0xea   : > { %651 = vst.msk [vmem:[%s983_s9 + $0x20] sm:$0xff] %vm646_vm2, %v618_v14  ;;  %667 = vst.msk [vmem:[%s983_s9 + $0xa0] sm:$0xff] %vm646_vm2, %v634_v15  ;;  %v559_v24 = vmul.f32 %v816_v16, %v966_v20  ;;  %v575_v25 = vmul.f32 %v832_v17, %v966_v20  ;;  %v453_v26 = vpop.f32.mrf.mxu0  ;;  %v517_v27 = vpop.f32.mrf.mxu1 }
  0xeb   : > { %654 = vst.msk [vmem:[%s983_s9 + $0x38] sm:$0xff] %vm646_vm2, %v621_v18  ;;  %670 = vst.msk [vmem:[%s983_s9 + $0xb8] sm:$0xff] %vm646_vm2, %v637_v19  ;;  %v619_v28 = vmax.f32 %v587_v21, 0.0  ;;  %v635_v29 = vmax.f32 %v603_v23, 0.0  ;;  %v557_v30 = vmul.f32 %v966_v20, %v453_v26  ;;  %v573_v31 = vmul.f32 %v966_v20, %v517_v27 }
  0xec   : > { %v592_v32 = vadd.f32 %v971_v22, %v559_v24  ;;  %v608_v33 = vadd.f32 %v971_v22, %v575_v25  ;;  %v817_v34 = vpop.f32.mrf.mxu0  ;;  %v833_v35 = vpop.f32.mrf.mxu1 }
  0xed   : > { %652 = vst.msk [vmem:[%s983_s9 + $0x28] sm:$0xff] %vm646_vm2, %v619_v28  ;;  %668 = vst.msk [vmem:[%s983_s9 + $0xa8] sm:$0xff] %vm646_vm2, %v635_v29  ;;  %v590_v36 = vadd.f32 %v971_v22, %v557_v30  ;;  %v606_v37 = vadd.f32 %v971_v22, %v573_v31  ;;  %v560_v38 = vmul.f32 %v817_v34, %v966_v20 }
  0xee   : > { %v576_v39 = vmul.f32 %v833_v35, %v966_v20  ;;  %v624_v40 = vmax.f32 %v592_v32, 0.0  ;;  %v640_v41 = vmax.f32 %v608_v33, 0.0  ;;  %v456_v42 = vpop.f32.mrf.mxu0  ;;  %v520_v43 = vpop.f32.mrf.mxu1 }
  0xef   : > { %v622_v44 = vmax.f32 %v590_v36, 0.0  ;;  %v638_v45 = vmax.f32 %v606_v37, 0.0  ;;  %v593_v46 = vadd.f32 %v971_v22, %v560_v38  ;;  %v558_v48 = vmul.f32 %v966_v20, %v456_v42 }
  0xf0   : > { %v609_v47 = vadd.f32 %v971_v22, %v576_v39  ;;  %657 = vst.msk [vmem:[%s983_s9 + $0x50] sm:$0xff] %vm646_vm2, %v624_v40  ;;  %673 = vst.msk [vmem:[%s983_s9 + $0xd0] sm:$0xff] %vm646_vm2, %v640_v41  ;;  %v574_v49 = vmul.f32 %v966_v20, %v520_v43  ;;  %v820_v50 = vpop.f32.mrf.mxu0  ;;  %v836_v51 = vpop.f32.mrf.mxu1 }
  0xf1   : > { %655 = vst.msk [vmem:[%s983_s9 + $0x40] sm:$0xff] %vm646_vm2, %v622_v44  ;;  %671 = vst.msk [vmem:[%s983_s9 + $0xc0] sm:$0xff] %vm646_vm2, %v638_v45  ;;  %v625_v52 = vmax.f32 %v593_v46, 0.0  ;;  %v563_v54 = vmul.f32 %v820_v50, %v966_v20  ;;  %v579_v55 = vmul.f32 %v836_v51, %v966_v20  ;;  %v591_v56 = vadd.f32 %v971_v22, %v558_v48 }
  0xf2   : > { %v641_v53 = vmax.f32 %v609_v47, 0.0  ;;  %v607_v57 = vadd.f32 %v971_v22, %v574_v49  ;;  %v469_v58 = vpop.f32.mrf.mxu0  ;;  %v533_v59 = vpop.f32.mrf.mxu1 }
  0xf3   : > { %658 = vst.msk [vmem:[%s983_s9 + $0x58] sm:$0xff] %vm646_vm2, %v625_v52  ;;  %v596_v60 = vadd.f32 %v971_v22, %v563_v54  ;;  %v612_v61 = vadd.f32 %v971_v22, %v579_v55  ;;  %v561_v62 = vmul.f32 %v966_v20, %v469_v58  ;;  %v577_v63 = vmul.f32 %v966_v20, %v533_v59 }
  0xf4   : > { %674 = vst.msk [vmem:[%s983_s9 + $0xd8] sm:$0xff] %vm646_vm2, %v641_v53  ;;  %v623_v0 = vmax.f32 %v591_v56, 0.0  ;;  %v639_v1 = vmax.f32 %v607_v57, 0.0  ;;  %v821_v2 = vpop.f32.mrf.mxu0  ;;  %v837_v3 = vpop.f32.mrf.mxu1 }
  0xf5   : > { %v628_v4 = vmax.f32 %v596_v60, 0.0  ;;  %v644_v5 = vmax.f32 %v612_v61, 0.0  ;;  %v594_v6 = vadd.f32 %v971_v22, %v561_v62  ;;  %v610_v7 = vadd.f32 %v971_v22, %v577_v63 }
  0xf6   : > { %656 = vst.msk [vmem:[%s983_s9 + $0x48] sm:$0xff] %vm646_vm2, %v623_v0  ;;  %672 = vst.msk [vmem:[%s983_s9 + $0xc8] sm:$0xff] %vm646_vm2, %v639_v1  ;;  %v564_v8 = vmul.f32 %v821_v2, %v966_v20  ;;  %v580_v9 = vmul.f32 %v837_v3, %v966_v20  ;;  %v472_v10 = vpop.f32.mrf.mxu0  ;;  %v536_v11 = vpop.f32.mrf.mxu1 }
  0xf7   : > { %661 = vst.msk [vmem:[%s983_s9 + $0x70] sm:$0xff] %vm646_vm2, %v628_v4  ;;  %677 = vst.msk [vmem:[%s983_s9 + $0xf0] sm:$0xff] %vm646_vm2, %v644_v5  ;;  %v626_v12 = vmax.f32 %v594_v6, 0.0  ;;  %v642_v13 = vmax.f32 %v610_v7, 0.0  ;;  %v562_v14 = vmul.f32 %v966_v20, %v472_v10  ;;  %v578_v15 = vmul.f32 %v966_v20, %v536_v11 }
  0xf8   : > { %v597_v16 = vadd.f32 %v971_v22, %v564_v8  ;;  %v613_v17 = vadd.f32 %v971_v22, %v580_v9 }
  0xf9   : > { %659 = vst.msk [vmem:[%s983_s9 + $0x60] sm:$0xff] %vm646_vm2, %v626_v12  ;;  %675 = vst.msk [vmem:[%s983_s9 + $0xe0] sm:$0xff] %vm646_vm2, %v642_v13  ;;  %v595_v18 = vadd.f32 %v971_v22, %v562_v14  ;;  %v611_v19 = vadd.f32 %v971_v22, %v578_v15 }
  0xfa   : > { %v629_v21 = vmax.f32 %v597_v16, 0.0  ;;  %v645_v23 = vmax.f32 %v613_v17, 0.0 }
  0xfb   : > { %v627_v24 = vmax.f32 %v595_v18, 0.0  ;;  %v643_v25 = vmax.f32 %v611_v19, 0.0 }
  0xfc   : > { %662 = vst.msk [vmem:[%s983_s9 + $0x78] sm:$0xff] %vm646_vm2, %v629_v21  ;;  %678 = vst.msk [vmem:[%s983_s9 + $0xf8] sm:$0xff] %vm646_vm2, %v645_v23 }
  0xfd   : > { %660 = vst.msk [vmem:[%s983_s9 + $0x68] sm:$0xff] %vm646_vm2, %v627_v24  ;;  %676 = vst.msk [vmem:[%s983_s9 + $0xe8] sm:$0xff] %vm646_vm2, %v643_v25 }
  0xfe PF: > { %s14_s15 = sadd.s32 1, %s879_s15  }
  0xff   : > { %p11_p4 = scmp.ge.s32.totalorder %s14_s15, 4  }
 0x101   :  { %13 = sbr.rel (!%p11_p4) target bundleno = 1 (0x1), region = 66 }

</bundles_post_ra>
